<compile_context>
chip_gen: v7x
topology: tpu7x:2x2x1
jax: 0.10.0
libtpu: 0.0.40
codegen_flags: <defaults>
</compile_context>

<pallas_src>
import jax
import jax.numpy as jnp
from jax.experimental import pallas as pl
from jax.experimental.pallas import tpu as pltpu

# --- "opts" for the synthetic module (small shapes) ---------------------------
TERM_EMBEDDING_DIM = 32   # opts.term_embedding_dim
NUM_EMBEDDINGS     = 1    # TermEmbedder: nn.Embedding(num_embeddings=1, ...)
BATCHSIZE          = 2    # opts.batchsize
LC_TERMS           = 3    # local-context terms per example (synthetic)

# Tokens per grid step. 4096 tokens -> (32, 4096) f32 output tile = 512 KiB,
# trivially double-buffered in VMEM on v5e/v6e/v7x, and large enough that the
# per-grid-step pipeline overhead (~0.35 us) is amortized. Multiple of 128 so
# output stores stay lane-dense.
BLOCK_COLS = 4096

# Below this token count, jnp.take (fused XLA gather) beats any pallas_call
# (launch + pad-to-128 + transpose overhead dominate).
SMALL_N_THRESHOLD = 1024

# The select-chain gather is only sensible for a tiny, static vocabulary.
MAX_SELECT_VOCAB = 8


def _embed_select_kernel(ids_ref, table_t_ref, out_t_ref):
    """Gather R embedding columns with a VPU broadcast+select chain.

    ids_ref     : VMEM (1, R)  int32  token ids for this tile
    table_t_ref : VMEM (D, V)  f32    transposed embedding table (tiny, resident)
    out_t_ref   : VMEM (D, R)  f32    transposed output tile (lane-dense stores)
    """
    ids = ids_ref[...]                          # (1, R)
    table_t = table_t_ref[...]                  # (D, V)
    v = table_t.shape[1]
    # Unrolled select chain (V is tiny and static): pure VPU work, no MXU push,
    # no O(V*R) iota/one-hot materialization. Out-of-range ids yield a zero
    # embedding (documented; torch nn.Embedding would error) — benign here
    # since V=1 and all valid ids are 0, and pad columns are sliced off anyway.
    out = jnp.zeros(out_t_ref.shape, jnp.float32)
    for row in range(v):
        out = jnp.where(ids == row, table_t[:, row:row + 1], out)
    out_t_ref[...] = out.astype(out_t_ref.dtype)


def _round_up(x, m):
    return ((x + m - 1) // m) * m


def _embedding_lookup_pallas(indices, table, *, block_cols=BLOCK_COLS):
    """Pallas TPU embedding gather: out[n, :] = table[indices[n], :]."""
    n = indices.shape[0]
    v, d = table.shape
    if v > MAX_SELECT_VOCAB:
        # TODO(synk): for a real vocabulary, switch to scalar-prefetched ids
        # (PrefetchScalarGridSpec num_scalar_prefetch=1) driving a pl.Element
        # row index_map, or keep the table in memory_space=pl.ANY and issue
        # per-row DMA gathers; on v7x also mark a VMEM-resident table
        # pipeline_mode=pl.Buffered(1) and set vmem_limit_bytes explicitly.
        raise NotImplementedError(
            "select-chain gather only supports tiny vocabularies")

    if n <= block_cols:
        # Small N: single grid step, pad the token axis to a 128-lane multiple.
        n_pad = _round_up(max(n, 128), 128)
        r = n_pad
    else:
        # Large N: block_cols-token tiles; grid sharded across TCs (v7x).
        n_pad = _round_up(n, block_cols)
        r = block_cols

    # Padded (1, n_pad) id slab (pad ids = 0; padded columns are sliced off).
    ids2d = jnp.zeros((1, n_pad), jnp.int32).at[0, :n].set(
        indices.astype(jnp.int32))
    # One-time layout plumbing: transposed table so the kernel's output lane
    # dimension is the large token axis, not D=32 (avoids masked vst.msk).
    table_t = table.T                            # (D, V) f32 (kept f32: exact)

    out_t = pl.pallas_call(
        _embed_select_kernel,
        out_shape=jax.ShapeDtypeStruct((d, n_pad), table.dtype),
        grid_spec=pltpu.PrefetchScalarGridSpec(
            num_scalar_prefetch=0,
            grid=(n_pad // r,),
            in_specs=[
                pl.BlockSpec((1, r), lambda i: (0, i)),   # ids tile
                pl.BlockSpec((d, v), lambda i: (0, 0)),   # whole (tiny) table
            ],
            out_specs=pl.BlockSpec((d, r), lambda i: (0, i)),
        ),
        compiler_params=pltpu.CompilerParams(
            # Output tiles are independent across the grid axis -> Mosaic may
            # shard it across both TensorCores on v7x (harmless on v5e/v6e).
            dimension_semantics=("parallel",)),
    )(ids2d, table_t)

    # Slice padded columns off BEFORE transposing so the XLA transpose only
    # touches the live N*D output (kernel is memory-bound; don't double the
    # HBM traffic on pad columns). Downstream consumers that can take (D, N)
    # directly should use out_t[:, :n] and skip the transpose entirely.
    return out_t[:, :n].T                        # (N, D)


def embedding_lookup(indices, table, *, block_cols=BLOCK_COLS,
                     force_pallas=False):
    """out[n, :] = table[indices[n], :] with a small-N fast path."""
    if indices.shape[0] < SMALL_N_THRESHOLD and not force_pallas:
        # Demo-sized N: pallas launch/pad/transpose overhead is pure loss.
        return jnp.take(table, indices, axis=0)
    return _embedding_lookup_pallas(indices, table, block_cols=block_cols)


class ProverPallas:
    """JAX/Pallas re-implementation of Prover.forward's embedding hot path."""

    # TODO(synk): TacticPredictor and the tactic_space.json load happen in
    # __init__ but are never used in forward(); not reproduced here.

    def __init__(self, key):
        # TermEmbedder weight: nn.Embedding default init is N(0, 1).
        self.term_embedding = jax.random.normal(
            key, (NUM_EMBEDDINGS, TERM_EMBEDDING_DIM), dtype=jnp.float32)

    def forward(self, batch):
        # get_texts() analogue: terms are already tokenised to int32 ids
        # (nn.Embedding consumes integer ids; vocab size is 1 so ids are 0).
        lc_ids = batch["local_context_ids"]    # (BATCHSIZE, LC_TERMS) int32
        goal_ids = batch["goal_ids"]           # (BATCHSIZE,)          int32

        # Single flat id vector; dispatch/tiling handled inside embedding_lookup.
        flat = jnp.concatenate([lc_ids.reshape(-1), goal_ids], axis=0)
        emb = embedding_lookup(flat, self.term_embedding)

        n_lc = lc_ids.size
        # lc_embeddings[i][j] == embedd(lc[i][j]); goal_embeddings[i] == embedd(goals[i])
        lc_embeddings = emb[:n_lc].reshape(BATCHSIZE, LC_TERMS, TERM_EMBEDDING_DIM)
        goal_embeddings = emb[n_lc:]           # (BATCHSIZE, TERM_EMBEDDING_DIM)
        return lc_embeddings, goal_embeddings


if __name__ == "__main__":
    key = jax.random.PRNGKey(0)
    k_emb, k_lc, k_goal, k_big = jax.random.split(key, 4)

    # Synthetic tokenised batch (vocab size 1 -> all valid ids are 0).
    batch = {
        "local_context_ids": jax.random.randint(
            k_lc, (BATCHSIZE, LC_TERMS), 0, NUM_EMBEDDINGS, dtype=jnp.int32),
        "goal_ids": jax.random.randint(
            k_goal, (BATCHSIZE,), 0, NUM_EMBEDDINGS, dtype=jnp.int32),
    }

    prover = ProverPallas(k_emb)
    lc_emb, goal_emb = prover.forward(batch)
    lc_emb = jax.block_until_ready(lc_emb)
    goal_emb = jax.block_until_ready(goal_emb)

    # Reference check against a plain-JAX embedding lookup.
    flat_ref = jnp.concatenate(
        [batch["local_context_ids"].reshape(-1), batch["goal_ids"]], axis=0)
    ref = jnp.take(prover.term_embedding, flat_ref, axis=0)
    ref_lc = ref[: BATCHSIZE * LC_TERMS].reshape(
        BATCHSIZE, LC_TERMS, TERM_EMBEDDING_DIM)
    ref_goal = ref[BATCHSIZE * LC_TERMS:]
    assert lc_emb.shape == (BATCHSIZE, LC_TERMS, TERM_EMBEDDING_DIM)
    assert goal_emb.shape == (BATCHSIZE, TERM_EMBEDDING_DIM)
    assert jnp.allclose(lc_emb, ref_lc) and jnp.allclose(goal_emb, ref_goal)

    # Exercise the Pallas kernel explicitly: (a) single-tile small-N path.
    pal_small = jax.block_until_ready(
        embedding_lookup(flat_ref, prover.term_embedding, force_pallas=True))
    assert pal_small.shape == ref.shape
    assert jnp.allclose(pal_small, ref)

    # (b) multi-tile path at a scaled token count (odd N -> padding exercised).
    n_big = 2 * BLOCK_COLS + 123
    big_ids = jax.random.randint(
        k_big, (n_big,), 0, NUM_EMBEDDINGS, dtype=jnp.int32)
    pal_big = jax.block_until_ready(
        embedding_lookup(big_ids, prover.term_embedding, force_pallas=True))
    assert pal_big.shape == (n_big, TERM_EMBEDDING_DIM)
    assert jnp.allclose(pal_big, jnp.take(prover.term_embedding, big_ids, axis=0))

    print("KERNEL_OK")
</pallas_src>

<mosaic_0001>
module attributes {stable_mosaic.version = 11 : i64} {
  func.func @_embed_select_kernel(%arg0: i32, %arg1: memref<1x128xi32, #tpu.memory_space<vmem>>, %arg2: memref<32x1xf32, #tpu.memory_space<vmem>>, %arg3: memref<32x128xf32, #tpu.memory_space<vmem>>) attributes {dimension_semantics = [#tpu.dimension_semantics<parallel>], iteration_bounds = array<i64: 1>, scalar_prefetch = 0 : i64, scratch_operands = 0 : i64, tpu.core_type = #tpu.core_type<tc>, window_params = [{transform_indices = @transform_0, window_bounds = array<i64: 1, 128>}, {pipeline_mode = #tpu.pipeline_mode<synchronous>, transform_indices = @transform_1, window_bounds = array<i64: 32, 1>}, {transform_indices = @transform_2, window_bounds = array<i64: 32, 128>}]} {
    %c0 = arith.constant 0 : index
    %c0_0 = arith.constant 0 : index
    %0 = vector.load %arg1[%c0, %c0_0] : memref<1x128xi32, #tpu.memory_space<vmem>>, vector<1x128xi32>
    %c0_1 = arith.constant 0 : index
    %c0_2 = arith.constant 0 : index
    %1 = vector.load %arg2[%c0_1, %c0_2] : memref<32x1xf32, #tpu.memory_space<vmem>>, vector<32x1xf32>
    %cst = arith.constant 0.000000e+00 : f32
    %2 = vector.broadcast %cst : f32 to vector<32x128xf32>
    %c0_i32 = arith.constant 0 : i32
    %3 = vector.broadcast %c0_i32 : i32 to vector<1x128xi32>
    %4 = arith.cmpi eq, %0, %3 : vector<1x128xi32>
    %5 = vector.shape_cast %4 : vector<1x128xi1> to vector<1x128xi1>
    %6 = vector.broadcast %5 : vector<1x128xi1> to vector<32x128xi1>
    %7 = vector.shape_cast %1 : vector<32x1xf32> to vector<32x1xf32>
    %8 = vector.broadcast %7 : vector<32x1xf32> to vector<32x128xf32>
    %9 = arith.select %6, %8, %2 : vector<32x128xi1>, vector<32x128xf32>
    %c0_3 = arith.constant 0 : index
    %c0_4 = arith.constant 0 : index
    %10 = vector.load %arg3[%c0_3, %c0_4] : memref<32x128xf32, #tpu.memory_space<vmem>>, vector<32x128xf32>
    tpu.vector_store %arg3[%c0_3, %c0_4], %9 {strides = array<i32>} : memref<32x128xf32, #tpu.memory_space<vmem>>, vector<32x128xf32>,
    return
  }
  func.func @transform_0(%arg0: i32) -> (i32, i32) {
    %c0_i32 = arith.constant 0 : i32
    %c0_i32_0 = arith.constant 0 : i32
    return %c0_i32, %arg0 : i32, i32
  }
  func.func @transform_1(%arg0: i32) -> (i32, i32) {
    %c0_i32 = arith.constant 0 : i32
    %c0_i32_0 = arith.constant 0 : i32
    %c0_i32_1 = arith.constant 0 : i32
    return %c0_i32, %c0_i32_0 : i32, i32
  }
  func.func @transform_2(%arg0: i32) -> (i32, i32) {
    %c0_i32 = arith.constant 0 : i32
    %c0_i32_0 = arith.constant 0 : i32
    return %c0_i32, %arg0 : i32, i32
  }
}

</mosaic_0001>

<bundles_post_ra>
// kernel: tpu_custom_call.1
= control target key start
LH: loop header
LB: loop body
LE: loop exit
PB: predicated region body
PF: predicated region fallthrough
CT: control target
= control target key end

     0   :  { %v98_v2 = vmov 0   ;;  %s144_s0 = inlined_call_operand.vmem [shape: s32[1,128], index: 0, kind: input, shape index: {}]   ;;  %s145_s1 = inlined_call_operand.vmem [shape: f32[32,1], index: 1, kind: input, shape index: {}]   ;;  %s146_s2 = inlined_call_operand.hbm [shape: f32[32,128], index: 2, kind: output, shape index: {}]  }
   0x1   :  { %v15_v0 = vld [vmem:[%s145_s1 + $0x10] sm:$0xff]  ;;  %v13_v1 = vld [vmem:[%s145_s1] sm:$0xff]  ;;  %73 = vset.pattern.permute.xlu1 %v98_v2  ;;  %72 = vset.pattern.permute.xlu0 %v98_v2 }
   0x2   :  { %7 = vsyncpa [#allocation3], 0  ;;  %36 = vperm.xlu1 %73, %v15_v0   ;;  %26 = vperm.xlu0 %72, %v13_v1   ;;  %v16_v3 = vld [vmem:[%s145_s1 + $0x18] sm:$0xff]  ;;  %v14_v4 = vld [vmem:[%s145_s1 + $0x8] sm:$0xff]  ;;  %v19_v5 = vlaneseq  ;;  %s99_s19 = smov [#allocation2]  }
   0x3   :  { %v12_v6 = vld [vmem:[%s144_s0] sm:$0x1]  ;;  %s57_s20 = sshll.u32 %s99_s19, 4  ;;  %s58_s20 = int_to_ptr.vmem [resolvable:$true] %s57_s20 }
   0x4   :  { %v20_v7 = vshrl.u32 %v19_v5, 7  ;;  %vm17_vm0 = vcmp.eq.s32.totalorder %v12_v6, 0  ;;  %s74_s0 = scalar_lea.vmem %s58_s20, 512  ;;  %p79_p1 = scmp.lt.s32.totalorder %s58_s20, %s58_s20 }
   0x5   :  { %v18_v9 = vsel %vm17_vm0, 1, %v98_v2  ;;  %p75_p0 = scmp.ne.s32.totalorder %s58_s20, %s74_s0  ;;  %p80_p2 = scmp.lt.s32.totalorder %s74_s0, %s74_s0 }
   0x6   :  { %41 = vperm.xlu1 %73, %v16_v3   ;;  %31 = vperm.xlu0 %72, %v14_v4   ;;  %v21_v8 = vsub.s32 0, %v20_v7 }
   0x7   :  { %p81_p3 = por %p80_p2, %p79_p1 }
   0x8   :  { %v22_v10 = vrot.slane %v18_v9, %v21_v8 }
   0x9   :  { %p82_p4 = pnand %p81_p3, %p75_p0 }
   0xa   :  { %vm23_vm1 = vcmp.eq.s32.totalorder %v22_v10, 1 }
  0x81   :  { %v37_v11 = vpop.permute.xlu1 %36  ;;  %v27_v12 = vpop.permute.xlu0 %26 }
  0x82   :  { %v46_v13 = vsel %vm23_vm1, %v37_v11, 0.0  ;;  %v44_v14 = vsel %vm23_vm1, %v27_v12, 0.0 }
  0x83   :  { %50 = vst [vmem:[#allocation2 + $0x10] sm:$0xff] %v46_v13  ;;  %48 = vst [vmem:[#allocation2] sm:$0xff] %v44_v14 }
  0x85   :  { %v42_v15 = vpop.permute.xlu1 %41  ;;  %v32_v16 = vpop.permute.xlu0 %31 }
  0x86   :  { %v47_v17 = vsel %vm23_vm1, %v42_v15, 0.0  ;;  %v45_v18 = vsel %vm23_vm1, %v32_v16, 0.0 }
  0x87   :  { %51 = vst [vmem:[#allocation2 + $0x18] sm:$0xff] %v47_v17  ;;  %49 = vst [vmem:[#allocation2 + $0x8] sm:$0xff] %v45_v18 }
  0x88   :  { %85 = shalt.err (!%p82_p4)
}
  0x89   :  { %s86_s22 = scalar_lea.hbm %s146_s2, 512 }
  0x8a   :  { %p87_p5 = scmp.ne.s32.totalorder %s146_s2, %s86_s22  ;;  %p90_p6 = scmp.lt.u32.totalorder %s86_s22, %s146_s2 }
  0x8c   :  { %p92_p7 = pnand %p90_p6, %p87_p5 }
  0x8e   :  { %95 = shalt.err (!%p92_p7)
}
  0x8f   :  { %s100_s27 = smov 128   ;;  %s101_s28 = smov 8  }
  0x90   :  { %63 = dma.vmem_to_hbm [thread:$0]  %s58_s20, 512, %s146_s2, [#allocation3], %s100_s27, %s100_s27, %s101_s28  }
  0x91   :  { %96 = dma.done.wait [#allocation3], 512  }
  0x92   :  { %97 = vsyncadd [#allocation3], 4294966784 }
  0x93   :  { %67 = vsyncpa [#allocation3], 1 }

</bundles_post_ra>
